<compile_context>
chip_gen: v5e
topology: v5e:2x2
jax: 0.10.0
libtpu: 0.0.40
codegen_flags: <defaults>
</compile_context>

<pallas_src>
import math

import jax
import jax.numpy as jnp
from jax.experimental import pallas as pl
from jax.experimental.pallas import tpu as pltpu

MAX_SEQ_LEN = 45

# Below this many bytes the pallas_call launch/DMA fixed cost dominates and a
# plain (fusable) XLA add is strictly faster.
_PALLAS_MIN_BYTES = 1 << 20          # 1 MiB
# Per-buffer VMEM budget for one tile (double-buffered x + out + resident PE
# must fit v5e's 16 MiB scoped-VMEM default; 2 MiB/buffer leaves ample room).
_TILE_BUDGET_BYTES = 2 * 1024 * 1024
_LANE = 128
_SUBLANE = 8


def _build_pe(d_model: int, max_len: int = MAX_SEQ_LEN) -> jnp.ndarray:
    """Deterministic positional-encoding table, identical to the PyTorch __init__."""
    position = jnp.arange(0, max_len, dtype=jnp.float32)[:, None]           # (max_len, 1)
    div_term = jnp.exp(
        jnp.arange(0, d_model, 2, dtype=jnp.float32) * (-math.log(10000.0) / d_model)
    )                                                                        # (d_model//2,)
    pe = jnp.zeros((max_len, d_model), dtype=jnp.float32)
    pe = pe.at[:, 0::2].set(jnp.sin(position * div_term))
    pe = pe.at[:, 1::2].set(jnp.cos(position * div_term))
    return pe                                                                # (max_len, d_model)


def _add_pe_kernel(x_ref, pe_ref, o_ref):
    # x_ref: (TB, SD_pad), pe_ref: (1, SD_pad) -> sublane-broadcast VPU add on
    # identically laid-out, lane-dense tiles.
    o_ref[...] = x_ref[...] + pe_ref[...]


def positional_encoding_forward(x: jnp.ndarray, pe_full: jnp.ndarray,
                                *, use_pallas: bool | None = None) -> jnp.ndarray:
    """x: (B, S, D). Returns x + pe[:S] broadcast over batch (PyTorch semantics)."""
    B, S, D = x.shape
    if S > pe_full.shape[0]:
        raise ValueError(
            f"sequence length {S} exceeds positional-encoding table length "
            f"{pe_full.shape[0]} (MAX_SEQ_LEN={MAX_SEQ_LEN})")

    pe = pe_full[:S, :].astype(x.dtype)                 # dtype-match: no in-kernel converts

    itemsize = jnp.dtype(x.dtype).itemsize
    total_bytes = B * S * D * itemsize
    if use_pallas is None:
        use_pallas = total_bytes >= _PALLAS_MIN_BYTES
    if not use_pallas:
        # KB-scale inputs: let XLA fuse the add with neighboring ops.
        return x + pe[None, :, :]

    # ---- Pallas path: lane-dense (B, S*D) view, padded to a multiple of 128 ----
    SD = S * D
    SD_pad = -(-SD // _LANE) * _LANE

    x2d = x.reshape(B, SD)
    pe_row = pe.reshape(1, SD)
    if SD_pad != SD:
        x2d = jnp.pad(x2d, ((0, 0), (0, SD_pad - SD)))
        pe_row = jnp.pad(pe_row, ((0, 0), (0, SD_pad - SD)))

    # Row-tile sizing: largest TB with TB*SD_pad*itemsize <= budget, multiple of
    # 8 sublanes when it is a partial block (full-array blocks are always legal).
    rows_budget = max(_SUBLANE, _TILE_BUDGET_BYTES // (SD_pad * itemsize))
    if rows_budget >= B:
        TB, B_pad = B, B
    else:
        TB = max(_SUBLANE, (rows_budget // _SUBLANE) * _SUBLANE)
        B_pad = -(-B // TB) * TB
    if B_pad != B:
        x2d = jnp.pad(x2d, ((0, B_pad - B), (0, 0)))

    grid = (B_pad // TB,)

    cost = pl.CostEstimate(
        flops=B_pad * SD_pad,
        transcendentals=0,
        bytes_accessed=(2 * B_pad * SD_pad + SD_pad) * itemsize,
    )

    # TODO(synk): for bf16 inputs with tiny B, a (B*S, D) row-major view with
    # >=16 rows/block packs sublanes better; kept the batch-row layout here so
    # the PE tile stays resident with a trivial index_map.
    out2d = pl.pallas_call(
        _add_pe_kernel,
        out_shape=jax.ShapeDtypeStruct((B_pad, SD_pad), x.dtype),
        grid=grid,
        in_specs=[
            pl.BlockSpec((TB, SD_pad), lambda i: (i, 0)),   # streamed x tiles
            pl.BlockSpec((1, SD_pad), lambda i: (0, 0)),    # PE tile: resident (same block every step)
        ],
        out_specs=pl.BlockSpec((TB, SD_pad), lambda i: (i, 0)),
        input_output_aliases={0: 0},                        # write back in place of x2d
        compiler_params=pltpu.CompilerParams(
            dimension_semantics=("parallel",),              # shard rows across v7x's 2 TCs
        ),
        cost_estimate=cost,
    )(x2d, pe_row)

    out2d = out2d[:B, :SD]
    return out2d.reshape(B, S, D)


if __name__ == "__main__":
    # Small shapes consistent with the module: batch=2, seq=8, d_model=32.
    B, S, D = 2, 8, 32

    key = jax.random.PRNGKey(0)
    x = jax.random.normal(key, (B, S, D), dtype=jnp.float32)

    pe_full = _build_pe(D, MAX_SEQ_LEN)

    # Force the Pallas path so the kernel itself is exercised at the demo shape
    # (the default threshold would route this 2 KB input to the fused XLA add).
    out = positional_encoding_forward(x, pe_full, use_pallas=True)
    out = jax.block_until_ready(out)

    # Sanity check against a pure-JAX reference of the PyTorch semantics.
    ref = x + pe_full[None, :S, :]
    assert out.shape == (B, S, D)
    assert jnp.allclose(out, ref, atol=1e-6), "mismatch vs reference"

    # Also exercise the small-input (non-Pallas) path once for coverage.
    out_small = jax.block_until_ready(positional_encoding_forward(x, pe_full))
    assert jnp.allclose(out_small, ref, atol=1e-6), "mismatch vs reference (fused path)"

    print("KERNEL_OK")
</pallas_src>

<mosaic_0001>
module attributes {stable_mosaic.version = 11 : i64} {
  func.func @_add_pe_kernel(%arg0: i32, %arg1: memref<2x256xf32, #tpu.memory_space<vmem>>, %arg2: memref<1x256xf32, #tpu.memory_space<vmem>>, %arg3: memref<2x256xf32, #tpu.memory_space<vmem>>) attributes {dimension_semantics = [#tpu.dimension_semantics<parallel>], iteration_bounds = array<i64: 1>, scalar_prefetch = 0 : i64, scratch_operands = 0 : i64, tpu.core_type = #tpu.core_type<tc>, window_params = [{transform_indices = @transform_0, window_bounds = array<i64: 2, 256>}, {pipeline_mode = #tpu.pipeline_mode<synchronous>, transform_indices = @transform_1, window_bounds = array<i64: 1, 256>}, {transform_indices = @transform_2, window_bounds = array<i64: 2, 256>}]} {
    %c0 = arith.constant 0 : index
    %c0_0 = arith.constant 0 : index
    %0 = vector.load %arg1[%c0, %c0_0] : memref<2x256xf32, #tpu.memory_space<vmem>>, vector<2x256xf32>
    %c0_1 = arith.constant 0 : index
    %c0_2 = arith.constant 0 : index
    %1 = vector.load %arg2[%c0_1, %c0_2] : memref<1x256xf32, #tpu.memory_space<vmem>>, vector<1x256xf32>
    %2 = vector.broadcast %1 : vector<1x256xf32> to vector<2x256xf32>
    %3 = arith.addf %0, %2 : vector<2x256xf32>
    %c0_3 = arith.constant 0 : index
    %c0_4 = arith.constant 0 : index
    %4 = vector.load %arg3[%c0_3, %c0_4] : memref<2x256xf32, #tpu.memory_space<vmem>>, vector<2x256xf32>
    tpu.vector_store %arg3[%c0_3, %c0_4], %3 {strides = array<i32>} : memref<2x256xf32, #tpu.memory_space<vmem>>, vector<2x256xf32>,
    return
  }
  func.func @transform_0(%arg0: i32) -> (i32, i32) {
    %c0_i32 = arith.constant 0 : i32
    %c0_i32_0 = arith.constant 0 : i32
    return %arg0, %c0_i32 : i32, i32
  }
  func.func @transform_1(%arg0: i32) -> (i32, i32) {
    %c0_i32 = arith.constant 0 : i32
    %c0_i32_0 = arith.constant 0 : i32
    %c0_i32_1 = arith.constant 0 : i32
    return %c0_i32, %c0_i32_0 : i32, i32
  }
  func.func @transform_2(%arg0: i32) -> (i32, i32) {
    %c0_i32 = arith.constant 0 : i32
    %c0_i32_0 = arith.constant 0 : i32
    return %arg0, %c0_i32 : i32, i32
  }
}

</mosaic_0001>

<bundles_post_ra>
// kernel: tpu_custom_call.1
= control target key start
LH: loop header
LB: loop body
LE: loop exit
PB: predicated region body
PF: predicated region fallthrough
CT: control target
= control target key end

     0   :  { %7 = vsyncpa [#allocation3], 0  ;;  %s134_s0 = inlined_call_operand.hbm [shape: f32[2,256], index: 0, kind: input, shape index: {}, may-alias: {0,2}]   ;;  %s135_s1 = inlined_call_operand.vmem [shape: f32[1,256], index: 1, kind: input, shape index: {}]   ;;  %s136_s2 = inlined_call_operand.hbm [shape: f32[2,256], index: 2, kind: output, shape index: {}, may-alias: {0,2}]  }
   0x1   :  { %8 = vsyncpa [#allocation4], 0  ;;  %s14_s11 = sshll.u32 %s134_s0, 4  ;;  %s108_s12 = smov [#allocation2]   ;;  %s15_s11 = int_to_ptr.hbm [resolvable:$true] %s14_s11 }
   0x2   :  { %s16_s13 = sshll.u32 %s108_s12, 4  ;;  %s17_s13 = int_to_ptr.vmem [resolvable:$true] %s16_s13 }
   0x3   :  { %19 = dma.hbm_to_vmem [thread:$0]  %s15_s11, 64, %s17_s13, [#allocation3]  }
   0x4   :  { %104 = dma.done.wait [#allocation3], 64  }
   0x5   :  { %105 = vsyncadd [#allocation3], 4294967232  ;;  %v27_v0 = vld [vmem:[%s135_s1] sm:$0x3]  ;;  %vm32_vm0 = vcmask 1041408   ;;  %s109_s16 = smov [#allocation5]  }
   0x6   :  { %v29_v1 = vperm.slane %v27_v0, 0  ;;  %v30_v2 = vperm.slane %v27_v0, 1  ;;  %v26_v3 = vld [vmem:[#allocation2] sm:$0xf]  ;;  %s42_s17 = sshll.u32 %s109_s16, 4  ;;  %s44_s19 = sshll.u32 %s136_s2, 4  ;;  %s43_s17 = int_to_ptr.vmem [resolvable:$true] %s42_s17  ;;  %s45_s19 = int_to_ptr.hbm [resolvable:$true] %s44_s19 }
   0x8   :  { %v31_v4 = vrot.slane %v30_v2, 6 }
   0xa   :  { %v33_v5 = vsel %vm32_vm0, %v29_v1, %v31_v4 }
   0xb   :  { %v35_v6 = vadd.f32 %v33_v5, %v26_v3 }
   0xd   :  { %36 = vst [vmem:[#allocation5] sm:$0xf] %v35_v6 }
   0xe   :  { %47 = dma.vmem_to_hbm [thread:$0]  %s43_s17, 64, %s45_s19, [#allocation4]  }
   0xf   :  { %106 = dma.done.wait [#allocation4], 64  }
  0x10   :  { %107 = vsyncadd [#allocation4], 4294967232 }
  0x11   :  { %52 = vsyncpa [#allocation3], 1 }
  0x12   :  { %53 = vsyncpa [#allocation4], 1 }

</bundles_post_ra>
